<compile_context>
chip_gen: v7x
topology: tpu7x:2x2x1
jax: 0.10.0
libtpu: 0.0.40
codegen_flags: <defaults>
</compile_context>

<pallas_src>
import functools

import jax
import jax.numpy as jnp
from jax import lax
from jax.experimental import pallas as pl
from jax.experimental.pallas import tpu as pltpu


def _gn_relu(y, gamma, beta, groups, eps, hw_valid):
    """GroupNorm (biased variance, matching nn.GroupNorm) + per-channel affine +
    ReLU on a (C, HWp) tile of ONE sample.  Only the first `hw_valid` lanes
    carry real pixels; remaining lanes are padding and excluded from stats."""
    c, hwp = y.shape
    cpg = c // groups
    inv_n = 1.0 / float(cpg * hw_valid)
    if hw_valid != hwp:
        lane = lax.broadcasted_iota(jnp.int32, (cpg, hwp), 1)
        valid = lane < hw_valid
    else:
        valid = None
    outs = []
    for g in range(groups):
        t = y[g * cpg:(g + 1) * cpg, :]
        tsum = jnp.sum(t if valid is None else jnp.where(valid, t, 0.0))
        mean = tsum * inv_n
        d = t - mean                                   # computed once, reused twice
        dsq = d * d
        var = jnp.sum(dsq if valid is None else jnp.where(valid, dsq, 0.0)) * inv_n
        scale = lax.rsqrt(var + eps) * gamma[g * cpg:(g + 1) * cpg, :]  # fold gamma
        o = d * scale + beta[g * cpg:(g + 1) * cpg, :]
        outs.append(jnp.maximum(o, 0.0))
    return outs[0] if groups == 1 else jnp.concatenate(outs, axis=0)


def _sep_conv_kernel(p_ref, w1_ref, w2_ref, g1_ref, b1_ref, g2_ref, b2_ref, o_ref,
                     *, nb, gd, gp, eps, hw_valid):
    # p_ref block: (nb, K, HWp)   o_ref block: (nb, c_out, HWp)   all lane-dense
    w1 = w1_ref[...]          # (c_mid, K)
    w2 = w2_ref[...]          # (c_out, c_mid)
    g1 = g1_ref[...]          # (c_mid, 1)
    b1 = b1_ref[...]
    g2 = g2_ref[...]          # (c_out, 1)
    b2 = b2_ref[...]
    for s in range(nb):                                # nb small (<=8) -> unrolled
        p = p_ref[s]                                   # (K, HWp)
        # stage 1: Conv2d(c_in -> c_mid, (k1,k2), 'same', dilation) as MXU matmul
        y = jnp.dot(w1, p, preferred_element_type=jnp.float32)     # (c_mid, HWp)
        y = _gn_relu(y, g1, b1, gd, eps, hw_valid)                 # GN + ReLU
        # stage 2: pointwise 1x1 Conv2d(c_mid -> c_out) as MXU matmul
        z = jnp.dot(w2, y, preferred_element_type=jnp.float32)     # (c_out, HWp)
        z = _gn_relu(z, g2, b2, gp, eps, hw_valid)                 # GN + ReLU
        o_ref[s] = z.astype(o_ref.dtype)               # full-lane (unmasked) store


def _tensorcores_per_chip():
    """v7x has 2 TensorCores/chip; v5e/v6e have 1.  Detection failure -> 1 (safe)."""
    try:
        kind = jax.devices()[0].device_kind.lower()
    except Exception:
        return 1
    return 2 if ("v7" in kind or "7x" in kind) else 1


def _pick_batch_block(n, cores, max_unroll=8):
    """Samples per grid step: whole batch on 1-TC chips, N/cores on v7x,
    capped so the in-kernel unroll stays small."""
    if cores > 1 and n % cores == 0:
        nb = n // cores
    else:
        nb = n
    if nb > max_unroll:
        nb = max(d for d in range(1, max_unroll + 1) if n % d == 0)
    return nb


def lazy_separable_conv2d(x, w_dw, g1, b1, w_pw, g2, b2, *,
                          dilation=1, gn_groups_dw=1, gn_groups_pw=1, eps=1e-5):
    """x: (N, C_in, H, W) float32 (PyTorch NCHW).
       w_dw: (C_mid, C_in, k1, k2) (bias=False), w_pw: (C_out, C_mid, 1, 1).
       g*/b*: GroupNorm affine params.  Returns (N, C_out, H, W)."""
    N, c_in, H, W = x.shape
    c_mid, _, k1, k2 = w_dw.shape
    c_out = w_pw.shape[0]
    K = k1 * k2 * c_in
    HW = H * W
    HWp = ((HW + 127) // 128) * 128            # lane-align flattened spatial dim

    # PyTorch Conv2d padding='same' (stride 1): extra pad on bottom/right.
    th, tw = dilation * (k1 - 1), dilation * (k2 - 1)
    x_pad = jnp.pad(x, ((0, 0), (0, 0),
                        (th // 2, th - th // 2), (tw // 2, tw - tw // 2)))

    # im2col (layout plumbing, wrapper-side): patches[n, (i*k2+j)*c_in + c, h*W+w]
    #   = x_pad[n, c, i*dil + h, j*dil + w]
    taps = []
    for i in range(k1):
        for j in range(k2):
            taps.append(lax.slice(
                x_pad, (0, 0, i * dilation, j * dilation),
                (N, c_in, i * dilation + H, j * dilation + W)))
    patches = jnp.stack(taps, axis=1).reshape(N, K, HW).astype(jnp.float32)
    if HWp != HW:
        patches = jnp.pad(patches, ((0, 0), (0, 0), (0, HWp - HW)))

    # conv weights as matmul matrices:
    #   w1m[m, (i*k2+j)*c_in + c] == w_dw[m, c, i, j];  w2m[o, m] == w_pw[o, m, 0, 0]
    w1m = jnp.transpose(w_dw, (0, 2, 3, 1)).reshape(c_mid, K).astype(jnp.float32)
    w2m = w_pw[:, :, 0, 0].astype(jnp.float32)
    g1c, b1c = g1.reshape(c_mid, 1), b1.reshape(c_mid, 1)
    g2c, b2c = g2.reshape(c_out, 1), b2.reshape(c_out, 1)

    # Generation-aware grid over the batch.
    nb = _pick_batch_block(N, _tensorcores_per_chip())
    grid = (N // nb,)

    kernel = functools.partial(_sep_conv_kernel, nb=nb, gd=gn_groups_dw,
                               gp=gn_groups_pw, eps=eps, hw_valid=HW)

    flops = 2 * N * HW * (K * c_mid + c_mid * c_out)
    bytes_accessed = 4 * (patches.size + N * c_out * HWp
                          + w1m.size + w2m.size + 2 * (c_mid + c_out))

    out = pl.pallas_call(
        kernel,
        out_shape=jax.ShapeDtypeStruct((N, c_out, HWp), x.dtype),
        grid=grid,
        in_specs=[
            pl.BlockSpec((nb, K, HWp), lambda b: (b, 0, 0)),
            pl.BlockSpec((c_mid, K), lambda b: (0, 0)),
            pl.BlockSpec((c_out, c_mid), lambda b: (0, 0)),
            pl.BlockSpec((c_mid, 1), lambda b: (0, 0)),
            pl.BlockSpec((c_mid, 1), lambda b: (0, 0)),
            pl.BlockSpec((c_out, 1), lambda b: (0, 0)),
            pl.BlockSpec((c_out, 1), lambda b: (0, 0)),
        ],
        out_specs=pl.BlockSpec((nb, c_out, HWp), lambda b: (b, 0, 0)),
        compiler_params=pltpu.CompilerParams(
            dimension_semantics=("parallel",)),
        cost_estimate=pl.CostEstimate(
            flops=flops,
            transcendentals=N * (gn_groups_dw + gn_groups_pw),
            bytes_accessed=bytes_accessed),
    )(patches, w1m, w2m, g1c, b1c, g2c, b2c)

    return out[:, :, :HW].reshape(N, c_out, H, W)


def _reference(x, w_dw, g1, b1, w_pw, g2, b2, dilation, gd, gp, eps=1e-5):
    """Pure-JAX reference mirroring the PyTorch module."""
    def gn(t, gamma, beta, groups):
        n, c, h, w = t.shape
        tg = t.reshape(n, groups, -1)
        mu = tg.mean(axis=2, keepdims=True)
        var = ((tg - mu) ** 2).mean(axis=2, keepdims=True)
        t = ((tg - mu) / jnp.sqrt(var + eps)).reshape(n, c, h, w)
        return t * gamma[None, :, None, None] + beta[None, :, None, None]

    k1, k2 = w_dw.shape[2:]
    th, tw = dilation * (k1 - 1), dilation * (k2 - 1)
    pad = ((th // 2, th - th // 2), (tw // 2, tw - tw // 2))
    y = lax.conv_general_dilated(x, w_dw, (1, 1), pad,
                                 rhs_dilation=(dilation, dilation),
                                 dimension_numbers=("NCHW", "OIHW", "NCHW"))
    y = jnp.maximum(gn(y, g1, b1, gd), 0.0)
    z = lax.conv_general_dilated(y, w_pw, (1, 1), "VALID",
                                 dimension_numbers=("NCHW", "OIHW", "NCHW"))
    z = jnp.maximum(gn(z, g2, b2, gp), 0.0)
    return z


if __name__ == "__main__":
    key = jax.random.PRNGKey(0)
    ks = jax.random.split(key, 7)

    N, c_in, H, W = 2, 4, 16, 16
    c_mid = 4                 # "dummy" hidden width in the PyTorch module
    c_out = 8
    k1 = k2 = 3
    dilation = 1

    x = jax.random.normal(ks[0], (N, c_in, H, W), jnp.float32)
    w_dw = 0.2 * jax.random.normal(ks[1], (c_mid, c_in, k1, k2), jnp.float32)
    g1 = 1.0 + 0.1 * jax.random.normal(ks[2], (c_mid,), jnp.float32)
    b1 = 0.1 * jax.random.normal(ks[3], (c_mid,), jnp.float32)
    w_pw = 0.5 * jax.random.normal(ks[4], (c_out, c_mid, 1, 1), jnp.float32)
    g2 = 1.0 + 0.1 * jax.random.normal(ks[5], (c_out,), jnp.float32)
    b2 = 0.1 * jax.random.normal(ks[6], (c_out,), jnp.float32)

    out = lazy_separable_conv2d(x, w_dw, g1, b1, w_pw, g2, b2,
                                dilation=dilation, gn_groups_dw=1, gn_groups_pw=1)
    out = jax.block_until_ready(out)

    ref = _reference(x, w_dw, g1, b1, w_pw, g2, b2, dilation, 1, 1)
    assert out.shape == (N, c_out, H, W) and out.dtype == jnp.float32
    max_err = float(jnp.max(jnp.abs(out - ref)))
    assert max_err < 5e-4, f"max abs err {max_err}"
    print("KERNEL_OK")
</pallas_src>

<mosaic_0001>
module attributes {stable_mosaic.version = 11 : i64} {
  func.func @_sep_conv_kernel(%arg0: i32, %arg1: memref<2x36x256xf32, #tpu.memory_space<vmem>>, %arg2: memref<4x36xf32, #tpu.memory_space<vmem>>, %arg3: memref<8x4xf32, #tpu.memory_space<vmem>>, %arg4: memref<4x1xf32, #tpu.memory_space<vmem>>, %arg5: memref<4x1xf32, #tpu.memory_space<vmem>>, %arg6: memref<8x1xf32, #tpu.memory_space<vmem>>, %arg7: memref<8x1xf32, #tpu.memory_space<vmem>>, %arg8: memref<2x8x256xf32, #tpu.memory_space<vmem>>) attributes {dimension_semantics = [#tpu.dimension_semantics<parallel>], iteration_bounds = array<i64: 1>, scalar_prefetch = 0 : i64, scratch_operands = 0 : i64, tpu.core_type = #tpu.core_type<tc>, window_params = [{transform_indices = @transform_0, window_bounds = array<i64: 2, 36, 256>}, {pipeline_mode = #tpu.pipeline_mode<synchronous>, transform_indices = @transform_1, window_bounds = array<i64: 4, 36>}, {pipeline_mode = #tpu.pipeline_mode<synchronous>, transform_indices = @transform_2, window_bounds = array<i64: 8, 4>}, {pipeline_mode = #tpu.pipeline_mode<synchronous>, transform_indices = @transform_3, window_bounds = array<i64: 4, 1>}, {pipeline_mode = #tpu.pipeline_mode<synchronous>, transform_indices = @transform_4, window_bounds = array<i64: 4, 1>}, {pipeline_mode = #tpu.pipeline_mode<synchronous>, transform_indices = @transform_5, window_bounds = array<i64: 8, 1>}, {pipeline_mode = #tpu.pipeline_mode<synchronous>, transform_indices = @transform_6, window_bounds = array<i64: 8, 1>}, {transform_indices = @transform_7, window_bounds = array<i64: 2, 8, 256>}]} {
    %c0 = arith.constant 0 : index
    %c0_0 = arith.constant 0 : index
    %0 = vector.load %arg2[%c0, %c0_0] : memref<4x36xf32, #tpu.memory_space<vmem>>, vector<4x36xf32>
    %c0_1 = arith.constant 0 : index
    %c0_2 = arith.constant 0 : index
    %1 = vector.load %arg3[%c0_1, %c0_2] : memref<8x4xf32, #tpu.memory_space<vmem>>, vector<8x4xf32>
    %c0_3 = arith.constant 0 : index
    %c0_4 = arith.constant 0 : index
    %2 = vector.load %arg4[%c0_3, %c0_4] : memref<4x1xf32, #tpu.memory_space<vmem>>, vector<4x1xf32>
    %c0_5 = arith.constant 0 : index
    %c0_6 = arith.constant 0 : index
    %3 = vector.load %arg5[%c0_5, %c0_6] : memref<4x1xf32, #tpu.memory_space<vmem>>, vector<4x1xf32>
    %c0_7 = arith.constant 0 : index
    %c0_8 = arith.constant 0 : index
    %4 = vector.load %arg6[%c0_7, %c0_8] : memref<8x1xf32, #tpu.memory_space<vmem>>, vector<8x1xf32>
    %c0_9 = arith.constant 0 : index
    %c0_10 = arith.constant 0 : index
    %5 = vector.load %arg7[%c0_9, %c0_10] : memref<8x1xf32, #tpu.memory_space<vmem>>, vector<8x1xf32>
    %c0_11 = arith.constant 0 : index
    %c0_12 = arith.constant 0 : index
    %c0_13 = arith.constant 0 : index
    %6 = vector.load %arg1[%c0_11, %c0_12, %c0_13] : memref<2x36x256xf32, #tpu.memory_space<vmem>>, vector<1x36x256xf32>
    %7 = vector.shape_cast %6 : vector<1x36x256xf32> to vector<36x256xf32>
    %cst = arith.constant dense<0.000000e+00> : vector<4x256xf32>
    %8 = tpu.matmul %0, %7, %cst {dimension_numbers = #tpu.dot_dimension_numbers<[1], [0], [0], [1], [0, 0, 1, 1], [], []>} : vector<4x36xf32>, vector<36x256xf32>, vector<4x256xf32> -> vector<4x256xf32>
    %9 = vector.shape_cast %8 : vector<4x256xf32> to vector<1x4x256xf32>
    %cst_14 = arith.constant dense<0.000000e+00> : vector<1xf32>
    %10 = vector.multi_reduction <add>, %9, %cst_14 [1, 2] : vector<1x4x256xf32> to vector<1xf32>
    %11 = vector.shape_cast %10 : vector<1xf32> to vector<1x1x1xf32>
    %12 = vector.extract %11[0, 0, 0] : f32 from vector<1x1x1xf32>
    %cst_15 = arith.constant 9.765625E-4 : f32
    %13 = arith.mulf %12, %cst_15 : f32
    %14 = vector.broadcast %13 : f32 to vector<4x256xf32>
    %15 = arith.subf %8, %14 : vector<4x256xf32>
    %16 = arith.mulf %15, %15 : vector<4x256xf32>
    %17 = vector.shape_cast %16 : vector<4x256xf32> to vector<1x4x256xf32>
    %cst_16 = arith.constant dense<0.000000e+00> : vector<1xf32>
    %18 = vector.multi_reduction <add>, %17, %cst_16 [1, 2] : vector<1x4x256xf32> to vector<1xf32>
    %19 = vector.shape_cast %18 : vector<1xf32> to vector<1x1x1xf32>
    %20 = vector.extract %19[0, 0, 0] : f32 from vector<1x1x1xf32>
    %cst_17 = arith.constant 9.765625E-4 : f32
    %21 = arith.mulf %20, %cst_17 : f32
    %cst_18 = arith.constant 9.99999974E-6 : f32
    %22 = arith.addf %21, %cst_18 : f32
    %23 = math.rsqrt %22 : f32
    %24 = vector.broadcast %23 : f32 to vector<4x1xf32>
    %25 = arith.mulf %24, %2 : vector<4x1xf32>
    %26 = vector.broadcast %25 : vector<4x1xf32> to vector<4x256xf32>
    %27 = arith.mulf %15, %26 : vector<4x256xf32>
    %28 = vector.broadcast %3 : vector<4x1xf32> to vector<4x256xf32>
    %29 = arith.addf %27, %28 : vector<4x256xf32>
    %cst_19 = arith.constant 0.000000e+00 : f32
    %30 = vector.broadcast %cst_19 : f32 to vector<4x256xf32>
    %31 = arith.maximumf %29, %30 : vector<4x256xf32>
    %cst_20 = arith.constant dense<0.000000e+00> : vector<8x256xf32>
    %32 = tpu.matmul %1, %31, %cst_20 {dimension_numbers = #tpu.dot_dimension_numbers<[1], [0], [0], [1], [0, 0, 1, 1], [], []>} : vector<8x4xf32>, vector<4x256xf32>, vector<8x256xf32> -> vector<8x256xf32>
    %33 = vector.shape_cast %32 : vector<8x256xf32> to vector<1x8x256xf32>
    %cst_21 = arith.constant dense<0.000000e+00> : vector<1xf32>
    %34 = vector.multi_reduction <add>, %33, %cst_21 [1, 2] : vector<1x8x256xf32> to vector<1xf32>
    %35 = vector.shape_cast %34 : vector<1xf32> to vector<1x1x1xf32>
    %36 = vector.extract %35[0, 0, 0] : f32 from vector<1x1x1xf32>
    %cst_22 = arith.constant 4.8828125E-4 : f32
    %37 = arith.mulf %36, %cst_22 : f32
    %38 = vector.broadcast %37 : f32 to vector<8x256xf32>
    %39 = arith.subf %32, %38 : vector<8x256xf32>
    %40 = arith.mulf %39, %39 : vector<8x256xf32>
    %41 = vector.shape_cast %40 : vector<8x256xf32> to vector<1x8x256xf32>
    %cst_23 = arith.constant dense<0.000000e+00> : vector<1xf32>
    %42 = vector.multi_reduction <add>, %41, %cst_23 [1, 2] : vector<1x8x256xf32> to vector<1xf32>
    %43 = vector.shape_cast %42 : vector<1xf32> to vector<1x1x1xf32>
    %44 = vector.extract %43[0, 0, 0] : f32 from vector<1x1x1xf32>
    %cst_24 = arith.constant 4.8828125E-4 : f32
    %45 = arith.mulf %44, %cst_24 : f32
    %cst_25 = arith.constant 9.99999974E-6 : f32
    %46 = arith.addf %45, %cst_25 : f32
    %47 = math.rsqrt %46 : f32
    %48 = vector.broadcast %47 : f32 to vector<8x1xf32>
    %49 = arith.mulf %48, %4 : vector<8x1xf32>
    %50 = vector.broadcast %49 : vector<8x1xf32> to vector<8x256xf32>
    %51 = arith.mulf %39, %50 : vector<8x256xf32>
    %52 = vector.broadcast %5 : vector<8x1xf32> to vector<8x256xf32>
    %53 = arith.addf %51, %52 : vector<8x256xf32>
    %cst_26 = arith.constant 0.000000e+00 : f32
    %54 = vector.broadcast %cst_26 : f32 to vector<8x256xf32>
    %55 = arith.maximumf %53, %54 : vector<8x256xf32>
    %c0_27 = arith.constant 0 : index
    %c0_28 = arith.constant 0 : index
    %c0_29 = arith.constant 0 : index
    %56 = vector.load %arg8[%c0_27, %c0_28, %c0_29] : memref<2x8x256xf32, #tpu.memory_space<vmem>>, vector<1x8x256xf32>
    %57 = vector.shape_cast %56 : vector<1x8x256xf32> to vector<8x256xf32>
    %58 = vector.shape_cast %55 : vector<8x256xf32> to vector<1x8x256xf32>
    tpu.vector_store %arg8[%c0_27, %c0_28, %c0_29], %58 {strides = array<i32>} : memref<2x8x256xf32, #tpu.memory_space<vmem>>, vector<1x8x256xf32>,
    %c1 = arith.constant 1 : index
    %c0_30 = arith.constant 0 : index
    %c0_31 = arith.constant 0 : index
    %59 = vector.load %arg1[%c1, %c0_30, %c0_31] : memref<2x36x256xf32, #tpu.memory_space<vmem>>, vector<1x36x256xf32>
    %60 = vector.shape_cast %59 : vector<1x36x256xf32> to vector<36x256xf32>
    %cst_32 = arith.constant dense<0.000000e+00> : vector<4x256xf32>
    %61 = tpu.matmul %0, %60, %cst_32 {dimension_numbers = #tpu.dot_dimension_numbers<[1], [0], [0], [1], [0, 0, 1, 1], [], []>} : vector<4x36xf32>, vector<36x256xf32>, vector<4x256xf32> -> vector<4x256xf32>
    %62 = vector.shape_cast %61 : vector<4x256xf32> to vector<1x4x256xf32>
    %cst_33 = arith.constant dense<0.000000e+00> : vector<1xf32>
    %63 = vector.multi_reduction <add>, %62, %cst_33 [1, 2] : vector<1x4x256xf32> to vector<1xf32>
    %64 = vector.shape_cast %63 : vector<1xf32> to vector<1x1x1xf32>
    %65 = vector.extract %64[0, 0, 0] : f32 from vector<1x1x1xf32>
    %cst_34 = arith.constant 9.765625E-4 : f32
    %66 = arith.mulf %65, %cst_34 : f32
    %67 = vector.broadcast %66 : f32 to vector<4x256xf32>
    %68 = arith.subf %61, %67 : vector<4x256xf32>
    %69 = arith.mulf %68, %68 : vector<4x256xf32>
    %70 = vector.shape_cast %69 : vector<4x256xf32> to vector<1x4x256xf32>
    %cst_35 = arith.constant dense<0.000000e+00> : vector<1xf32>
    %71 = vector.multi_reduction <add>, %70, %cst_35 [1, 2] : vector<1x4x256xf32> to vector<1xf32>
    %72 = vector.shape_cast %71 : vector<1xf32> to vector<1x1x1xf32>
    %73 = vector.extract %72[0, 0, 0] : f32 from vector<1x1x1xf32>
    %cst_36 = arith.constant 9.765625E-4 : f32
    %74 = arith.mulf %73, %cst_36 : f32
    %cst_37 = arith.constant 9.99999974E-6 : f32
    %75 = arith.addf %74, %cst_37 : f32
    %76 = math.rsqrt %75 : f32
    %77 = vector.broadcast %76 : f32 to vector<4x1xf32>
    %78 = arith.mulf %77, %2 : vector<4x1xf32>
    %79 = vector.broadcast %78 : vector<4x1xf32> to vector<4x256xf32>
    %80 = arith.mulf %68, %79 : vector<4x256xf32>
    %81 = vector.broadcast %3 : vector<4x1xf32> to vector<4x256xf32>
    %82 = arith.addf %80, %81 : vector<4x256xf32>
    %cst_38 = arith.constant 0.000000e+00 : f32
    %83 = vector.broadcast %cst_38 : f32 to vector<4x256xf32>
    %84 = arith.maximumf %82, %83 : vector<4x256xf32>
    %cst_39 = arith.constant dense<0.000000e+00> : vector<8x256xf32>
    %85 = tpu.matmul %1, %84, %cst_39 {dimension_numbers = #tpu.dot_dimension_numbers<[1], [0], [0], [1], [0, 0, 1, 1], [], []>} : vector<8x4xf32>, vector<4x256xf32>, vector<8x256xf32> -> vector<8x256xf32>
    %86 = vector.shape_cast %85 : vector<8x256xf32> to vector<1x8x256xf32>
    %cst_40 = arith.constant dense<0.000000e+00> : vector<1xf32>
    %87 = vector.multi_reduction <add>, %86, %cst_40 [1, 2] : vector<1x8x256xf32> to vector<1xf32>
    %88 = vector.shape_cast %87 : vector<1xf32> to vector<1x1x1xf32>
    %89 = vector.extract %88[0, 0, 0] : f32 from vector<1x1x1xf32>
    %cst_41 = arith.constant 4.8828125E-4 : f32
    %90 = arith.mulf %89, %cst_41 : f32
    %91 = vector.broadcast %90 : f32 to vector<8x256xf32>
    %92 = arith.subf %85, %91 : vector<8x256xf32>
    %93 = arith.mulf %92, %92 : vector<8x256xf32>
    %94 = vector.shape_cast %93 : vector<8x256xf32> to vector<1x8x256xf32>
    %cst_42 = arith.constant dense<0.000000e+00> : vector<1xf32>
    %95 = vector.multi_reduction <add>, %94, %cst_42 [1, 2] : vector<1x8x256xf32> to vector<1xf32>
    %96 = vector.shape_cast %95 : vector<1xf32> to vector<1x1x1xf32>
    %97 = vector.extract %96[0, 0, 0] : f32 from vector<1x1x1xf32>
    %cst_43 = arith.constant 4.8828125E-4 : f32
    %98 = arith.mulf %97, %cst_43 : f32
    %cst_44 = arith.constant 9.99999974E-6 : f32
    %99 = arith.addf %98, %cst_44 : f32
    %100 = math.rsqrt %99 : f32
    %101 = vector.broadcast %100 : f32 to vector<8x1xf32>
    %102 = arith.mulf %101, %4 : vector<8x1xf32>
    %103 = vector.broadcast %102 : vector<8x1xf32> to vector<8x256xf32>
    %104 = arith.mulf %92, %103 : vector<8x256xf32>
    %105 = vector.broadcast %5 : vector<8x1xf32> to vector<8x256xf32>
    %106 = arith.addf %104, %105 : vector<8x256xf32>
    %cst_45 = arith.constant 0.000000e+00 : f32
    %107 = vector.broadcast %cst_45 : f32 to vector<8x256xf32>
    %108 = arith.maximumf %106, %107 : vector<8x256xf32>
    %c1_46 = arith.constant 1 : index
    %c0_47 = arith.constant 0 : index
    %c0_48 = arith.constant 0 : index
    %109 = vector.load %arg8[%c1_46, %c0_47, %c0_48] : memref<2x8x256xf32, #tpu.memory_space<vmem>>, vector<1x8x256xf32>
    %110 = vector.shape_cast %109 : vector<1x8x256xf32> to vector<8x256xf32>
    %111 = vector.shape_cast %108 : vector<8x256xf32> to vector<1x8x256xf32>
    tpu.vector_store %arg8[%c1_46, %c0_47, %c0_48], %111 {strides = array<i32>} : memref<2x8x256xf32, #tpu.memory_space<vmem>>, vector<1x8x256xf32>,
    return
  }
  func.func @transform_0(%arg0: i32) -> (i32, i32, i32) {
    %c0_i32 = arith.constant 0 : i32
    %c0_i32_0 = arith.constant 0 : i32
    %c0_i32_1 = arith.constant 0 : i32
    return %arg0, %c0_i32, %c0_i32_0 : i32, i32, i32
  }
  func.func @transform_1(%arg0: i32) -> (i32, i32) {
    %c0_i32 = arith.constant 0 : i32
    %c0_i32_0 = arith.constant 0 : i32
    %c0_i32_1 = arith.constant 0 : i32
    return %c0_i32, %c0_i32_0 : i32, i32
  }
  func.func @transform_2(%arg0: i32) -> (i32, i32) {
    %c0_i32 = arith.constant 0 : i32
    %c0_i32_0 = arith.constant 0 : i32
    %c0_i32_1 = arith.constant 0 : i32
    return %c0_i32, %c0_i32_0 : i32, i32
  }
  func.func @transform_3(%arg0: i32) -> (i32, i32) {
    %c0_i32 = arith.constant 0 : i32
    %c0_i32_0 = arith.constant 0 : i32
    %c0_i32_1 = arith.constant 0 : i32
    return %c0_i32, %c0_i32_0 : i32, i32
  }
  func.func @transform_4(%arg0: i32) -> (i32, i32) {
    %c0_i32 = arith.constant 0 : i32
    %c0_i32_0 = arith.constant 0 : i32
    %c0_i32_1 = arith.constant 0 : i32
    return %c0_i32, %c0_i32_0 : i32, i32
  }
  func.func @transform_5(%arg0: i32) -> (i32, i32) {
    %c0_i32 = arith.constant 0 : i32
    %c0_i32_0 = arith.constant 0 : i32
    %c0_i32_1 = arith.constant 0 : i32
    return %c0_i32, %c0_i32_0 : i32, i32
  }
  func.func @transform_6(%arg0: i32) -> (i32, i32) {
    %c0_i32 = arith.constant 0 : i32
    %c0_i32_0 = arith.constant 0 : i32
    %c0_i32_1 = arith.constant 0 : i32
    return %c0_i32, %c0_i32_0 : i32, i32
  }
  func.func @transform_7(%arg0: i32) -> (i32, i32, i32) {
    %c0_i32 = arith.constant 0 : i32
    %c0_i32_0 = arith.constant 0 : i32
    %c0_i32_1 = arith.constant 0 : i32
    return %arg0, %c0_i32, %c0_i32_0 : i32, i32, i32
  }
}

</mosaic_0001>

<bundles_post_ra>
// kernel: tpu_custom_call.1
= control target key start
LH: loop header
LB: loop body
LE: loop exit
PB: predicated region body
PF: predicated region fallthrough
CT: control target
= control target key end

     0   :  { %v687_v7 = vmov 0.0   ;;  %s877_s0 = inlined_call_operand.vmem [shape: f32[2,36,256], index: 0, kind: input, shape index: {}]   ;;  %s878_s1 = inlined_call_operand.vmem [shape: f32[4,36], index: 1, kind: input, shape index: {}]   ;;  %s879_s2 = inlined_call_operand.vmem [shape: f32[8,4], index: 2, kind: input, shape index: {}]   ;;  %s880_s3 = inlined_call_operand.vmem [shape: f32[4,1], index: 3, kind: input, shape index: {}]   ;;  %s881_s4 = inlined_call_operand.vmem [shape: f32[4,1], index: 4, kind: input, shape index: {}]   ;;  %s882_s5 = inlined_call_operand.vmem [shape: f32[8,1], index: 5, kind: input, shape index: {}]   ;;  %s883_s6 = inlined_call_operand.vmem [shape: f32[8,1], index: 6, kind: input, shape index: {}]   ;;  %s884_s7 = inlined_call_operand.hbm [shape: f32[2,8,256], index: 7, kind: output, shape index: {}]  }
   0x1   :  { %v34_v0 = vld [vmem:[%s877_s0 + $0x8] sm:$0xff]  ;;  %v36_v1 = vld [vmem:[%s877_s0 + $0x18] sm:$0xff]  ;;  %v33_v2 = vld [vmem:[%s877_s0] sm:$0xff]  ;;  %118 = vmatprep.mubr.f32.mxu0 %v687_v7  ;;  %252 = vmatprep.mubr.f32.mxu1 %v687_v7 }
   0x2   :  { %v608_v3 = vpack.c.bf16 %v36_v1, %v34_v0  ;;  %v35_v4 = vld [vmem:[%s877_s0 + $0x10] sm:$0xff]  ;;  %v38_v5 = vld [vmem:[%s877_s0 + $0x28] sm:$0xff]  ;;  %v40_v6 = vld [vmem:[%s877_s0 + $0x38] sm:$0xff] }
   0x3   :  { %v610_v8 = vpack.c.bf16 %v35_v4, %v33_v2  ;;  %v612_v9 = vpack.c.bf16 %v40_v6, %v38_v5  ;;  %v37_v10 = vld [vmem:[%s877_s0 + $0x20] sm:$0xff]  ;;  %v39_v11 = vld [vmem:[%s877_s0 + $0x30] sm:$0xff] }
   0x4   :  { %609 = vmatprep.subr.bf16.mxu0 %v608_v3 }
   0x5   :  { %12 = vsyncpa [#allocation3], 0  ;;  %611 = vmatpush1.bf16.msra.mxu0 %v610_v8  ;;  %v614_v12 = vpack.c.bf16 %v39_v11, %v37_v10  ;;  %v42_v13 = vld [vmem:[%s877_s0 + $0x48] sm:$0xf]  ;;  %vm47_vm0 = vcmask 1043456   ;;  %vm43_vm1 = vcmask 293888  }
   0x6   :  { %613 = vmatprep.subr.bf16.mxu0 %v612_v9  ;;  %v41_v14 = vld [vmem:[%s877_s0 + $0x40] sm:$0xf]  ;;  %v688_v38 = vmov 0   ;;  %vm178_vm2 = vcmask 31744   ;;  %v593_v59 = vld [vmem:[%s877_s0 + $0x58] sm:$0xff]  ;;  %v595_v60 = vld [vmem:[%s877_s0 + $0x68] sm:$0xff] }
   0x7   :  { %v768_v15 = vld [vmem:[%s878_s1] sm:$0xf]  ;;  %653 = vset.pattern.permute.xlu1 %v688_v38  ;;  %654 = vset.pattern.permute.xlu0 %v688_v38  ;;  %v592_v61 = vld [vmem:[%s877_s0 + $0x50] sm:$0xff]  ;;  %v616_v62 = vpack.c.bf16 %v595_v60, %v593_v59  ;;  %v597_v0 = vld [vmem:[%s877_s0 + $0x78] sm:$0xff]  ;;  %s689_s21 = smov [#allocation2]  }
   0x8   :  { %v781_v46 = vld [vmem:[%s880_s3] sm:$0xf]  ;;  %v599_v1 = vld [vmem:[%s877_s0 + $0x88] sm:$0xff]  ;;  %v596_v4 = vld [vmem:[%s877_s0 + $0x70] sm:$0xff]  ;;  %s575_s22 = sshll.u32 %s689_s21, 4  ;;  %s576_s22 = int_to_ptr.vmem [resolvable:$true] %s575_s22 }
   0x9   :  { %615 = vmatpush1.bf16.msra.mxu0 %v614_v12  ;;  %v30_v49 = vld [vmem:[%s881_s4] sm:$0xf]  ;;  %v620_v3 = vpack.c.bf16 %v599_v1, %v597_v0  ;;  %v600_v8 = vld [vmem:[%s877_s0 + $0x90] sm:$0xf]  ;;  %p668_p1 = scmp.lt.s32.totalorder %s576_s22, %s576_s22 }
   0xa   :  { %586 = vmatprep.subr.msk.mxu0 %vm47_vm0, %v42_v13  ;;  %v794_v58 = vld [vmem:[%s879_s2] sm:$0xff] }
   0xb   :  { %v594_v63 = vld [vmem:[%s877_s0 + $0x60] sm:$0xff] }
   0xc   :  { %v618_v2 = vpack.c.bf16 %v594_v63, %v592_v61  ;;  %v598_v5 = vld [vmem:[%s877_s0 + $0x80] sm:$0xff] }
   0xd   :  { %587 = vmatpush1.msk.msra.mxu0 %vm47_vm0, %v41_v14  ;;  %v622_v6 = vpack.c.bf16 %v598_v5, %v596_v4 }
   0xe   :  { %588 = vmatmul.mubr.msk.f32.vlgmr.msra.gmra.mrb[0].mxu0 %vm43_vm1, %v768_v15 }
   0xf   :  { %516 = vmatprep.mubr.f32.mxu0 %v687_v7 }
  0xe1   :  { %v120_v16 = vpop.f32.mrb[0].mxu0 }
  0xe2   :  { %v122_v17 = vpop.f32.mrb[1].mxu0  ;;  %v125_v18 = vsel %vm47_vm0, %v120_v16, 0.0 }
  0xe3   :  { %v126_v19 = vsel %vm47_vm0, %v122_v17, 0.0 }
  0xe4   :  { %v127_v20 = vadd.f32 %v126_v19, %v125_v18 }
  0xe6   :  { %128 = vadd.xlane.f32.xlu0 %v127_v20 }
 0x173   :  { %v129_v21 = vpop.xlane.xlu0 %128 }
 0x174   :  { %v130_v22 = vrot.slane %v129_v21, 4 }
 0x176   :  { %v131_v23 = vadd.f32 %v130_v22, %v129_v21 }
 0x178   :  { %v132_v24 = vrot.slane %v131_v23, 2 }
 0x17a   :  { %v133_v25 = vadd.f32 %v132_v24, %v131_v23 }
 0x17c   :  { %v134_v26 = vrot.slane %v133_v25, 1 }
 0x17e   :  { %v135_v27 = vadd.f32 %v134_v26, %v133_v25 }
 0x180   :  { %624 = vpush %v135_v27 }
 0x1b1   :  { %s625_s1 = spop %624 }
 0x1b2   :  { %s137_s23 = smul.f32 0.0009765625, %s625_s1 }
 0x1b4   :  { %v138_v28 = vstv %s137_s23 }
 0x1b5   :  { %v139_v29 = vsub.f32 %v120_v16, %v138_v28  ;;  %v140_v30 = vsub.f32 %v122_v17, %v138_v28 }
 0x1b7   :  { %v141_v31 = vmul.f32 %v139_v29, %v139_v29  ;;  %v142_v32 = vmul.f32 %v140_v30, %v140_v30 }
 0x1b9   :  { %v143_v33 = vsel %vm47_vm0, %v141_v31, 0.0  ;;  %v144_v34 = vsel %vm47_vm0, %v142_v32, 0.0 }
 0x1ba   :  { %v145_v35 = vadd.f32 %v144_v34, %v143_v33 }
 0x1bc   :  { %146 = vadd.xlane.f32.xlu0 %v145_v35 }
 0x249   :  { %v147_v36 = vpop.xlane.xlu0 %146 }
 0x24a   :  { %v148_v37 = vrot.slane %v147_v36, 4 }
 0x24c   :  { %v149_v39 = vadd.f32 %v148_v37, %v147_v36 }
 0x24e   :  { %v150_v40 = vrot.slane %v149_v39, 2 }
 0x250   :  { %v151_v41 = vadd.f32 %v150_v40, %v149_v39 }
 0x252   :  { %v152_v42 = vrot.slane %v151_v41, 1 }
 0x254   :  { %v153_v43 = vadd.f32 %v152_v42, %v151_v41 }
 0x256   :  { %626 = vpush %v153_v43 }
 0x287   :  { %s627_s24 = spop %626 }
 0x288   :  { %s155_s25 = smul.f32 0.0009765625, %s627_s24 }
 0x28a   :  { %s156_s26 = sadd.f32 1e-05, %s155_s25 }
 0x28c   :  { %v157_v44 = vstv %s156_s26 }
 0x28d   :  { %655 = vrsqrt.f32 %v157_v44 }
 0x297   :  { %v656_v45 = vpop.eup %655 }
 0x298   :  { %628 = vpush %v656_v45 }
 0x2c9   :  { %s629_s29 = spop %628 }
 0x2ca   :  { %v160_v47 = vstv %s629_s29 }
 0x2cb   :  { %v161_v48 = vmul.f32 %v160_v47, %v781_v46 }
 0x2cd   :  { %164 = vperm.xlu1 %653, %v161_v48  }
 0x2d1   :  { %171 = vperm.xlu1 %653, %v30_v49  }
 0x34c   :  { %v165_v50 = vpop.permute.xlu1 %164 }
 0x34d   :  { %v167_v51 = vmul.f32 %v165_v50, %v139_v29  ;;  %v168_v52 = vmul.f32 %v165_v50, %v140_v30 }
 0x350   :  { %v787_v53 = vpop.permute.xlu1 %171 }
 0x351   :  { %v175_v54 = vadd.f32 %v787_v53, %v168_v52  ;;  %v174_v55 = vadd.f32 %v787_v53, %v167_v51 }
 0x353   :  { %v177_v56 = vmax.f32 %v175_v54, 0.0  ;;  %v176_v57 = vmax.f32 %v174_v55, 0.0 }
 0x355   :  { %589 = vmatprep.subr.msk.mxu1 %vm47_vm0, %v177_v56 }
 0x356   :  { %590 = vmatpush1.msk.msra.mxu1 %vm47_vm0, %v176_v57 }
 0x357   :  { %591 = vmatmul.mubr.msk.f32.vlgmr.msra.gmra.mrb[0].mxu1 %vm178_vm2, %v794_v58  ;;  %617 = vmatprep.subr.bf16.mxu1 %v616_v62 }
 0x358   :  { %391 = vmatprep.mubr.f32.mxu1 %v687_v7  ;;  %619 = vmatpush1.bf16.msra.mxu1 %v618_v2  ;;  %v601_v7 = vld [vmem:[%s877_s0 + $0x98] sm:$0xf] }
 0x359   :  { %621 = vmatprep.subr.bf16.mxu1 %v620_v3 }
 0x35c   :  { %623 = vmatpush1.bf16.msra.mxu1 %v622_v6 }
 0x35d   :  { %602 = vmatprep.subr.msk.mxu1 %vm47_vm0, %v601_v7 }
 0x360   :  { %603 = vmatpush1.msk.msra.mxu1 %vm47_vm0, %v600_v8 }
 0x361   :  { %604 = vmatmul.mubr.msk.f32.vlgmr.msra.gmra.mrb[2].mxu1 %vm43_vm1, %v768_v15 }
 0x42a   :  { %v254_v9 = vpop.f32.mrb[0].mxu1 }
 0x42b   :  { %v256_v10 = vpop.f32.mrb[1].mxu1 }
 0x42c   :  { %v259_v11 = vadd.f32 %v256_v10, %v254_v9 }
 0x42e   :  { %260 = vadd.xlane.f32.xlu0 %v259_v11 }
 0x434   :  { %v393_v12 = vpop.f32.mrb[2].mxu1 }
 0x435   :  { %v398_v13 = vsel %vm47_vm0, %v393_v12, 0.0  ;;  %v395_v14 = vpop.f32.mrb[3].mxu1 }
 0x436   :  { %v399_v16 = vsel %vm47_vm0, %v395_v14, 0.0 }
 0x437   :  { %v400_v17 = vadd.f32 %v399_v16, %v398_v13 }
 0x439   :  { %401 = vadd.xlane.f32.xlu0 %v400_v17 }
 0x4bb   :  { %v261_v18 = vpop.xlane.xlu0 %260 }
 0x4bc   :  { %v262_v19 = vrot.slane %v261_v18, 4 }
 0x4be   :  { %v263_v20 = vadd.f32 %v262_v19, %v261_v18 }
 0x4c0   :  { %v264_v21 = vrot.slane %v263_v20, 2 }
 0x4c2   :  { %v265_v22 = vadd.f32 %v264_v21, %v263_v20 }
 0x4c4   :  { %v266_v23 = vrot.slane %v265_v22, 1 }
 0x4c6   :  { %v267_v24 = vadd.f32 %v266_v23, %v265_v22  ;;  %v402_v37 = vpop.xlane.xlu0 %401 }
 0x4c7   :  { %v403_v38 = vrot.slane %v402_v37, 4 }
 0x4c8   :  { %630 = vpush %v267_v24 }
 0x4c9   :  { %v404_v39 = vadd.f32 %v403_v38, %v402_v37 }
 0x4cb   :  { %v405_v40 = vrot.slane %v404_v39, 2 }
 0x4cd   :  { %v406_v42 = vadd.f32 %v405_v40, %v404_v39  ;;  %v32_v40 = vld [vmem:[%s883_s6] sm:$0xff]  ;;  %s663_s6 = scalar_lea.vmem %s576_s22, 512 }
 0x4ce   :  { %p664_p0 = scmp.ne.s32.totalorder %s576_s22, %s663_s6  ;;  %p669_p2 = scmp.lt.s32.totalorder %s663_s6, %s663_s6 }
 0x4cf   :  { %v407_v43 = vrot.slane %v406_v42, 1 }
 0x4d0   :  { %p670_p3 = por %p669_p2, %p668_p1 }
 0x4d1   :  { %v408_v45 = vadd.f32 %v407_v43, %v406_v42 }
 0x4d2   :  { %p671_p4 = pnand %p670_p3, %p664_p0 }
 0x4f9   :  { %s631_s0 = spop %630 }
 0x4fa   :  { %s269_s27 = smul.f32 0.00048828125, %s631_s0 }
 0x4fc   :  { %v270_v15 = vstv %s269_s27 }
 0x4fd   :  { %v837_v25 = vsub.f32 %v254_v9, %v270_v15  ;;  %v839_v26 = vsub.f32 %v256_v10, %v270_v15  ;;  %v31_v15 = vld [vmem:[%s882_s5] sm:$0xff] }
 0x4ff   :  { %v273_v27 = vmul.f32 %v837_v25, %v837_v25  ;;  %v274_v28 = vmul.f32 %v839_v26, %v839_v26 }
 0x501   :  { %v275_v29 = vadd.f32 %v274_v28, %v273_v27 }
 0x503   :  { %276 = vadd.xlane.f32.xlu1 %v275_v29 }
 0x590   :  { %v277_v30 = vpop.xlane.xlu1 %276 }
 0x591   :  { %v278_v31 = vrot.slane %v277_v30, 4 }
 0x593   :  { %v279_v32 = vadd.f32 %v278_v31, %v277_v30 }
 0x595   :  { %v280_v33 = vrot.slane %v279_v32, 2 }
 0x597   :  { %v281_v34 = vadd.f32 %v280_v33, %v279_v32 }
 0x599   :  { %v282_v35 = vrot.slane %v281_v34, 1 }
 0x59b   :  { %v283_v36 = vadd.f32 %v282_v35, %v281_v34 }
 0x59d   :  { %632 = vpush %v283_v36 }
 0x5ce   :  { %s633_s28 = spop %632 }
 0x5cf   :  { %s285_s29 = smul.f32 0.00048828125, %s633_s28 }
 0x5d1   :  { %s286_s30 = sadd.f32 1e-05, %s285_s29 }
 0x5d3   :  { %v287_v41 = vstv %s286_s30 }
 0x5d4   :  { %657 = vrsqrt.f32 %v287_v41 }
 0x5de   :  { %v658_v44 = vpop.eup %657 }
 0x5df   :  { %634 = vpush %v658_v44 }
 0x5e0   :  { %636 = vpush %v408_v45 }
 0x610   :  { %s845_s8 = spop %634 }
 0x611   :  { %s637_s3 = spop %636  ;;  %v290_v27 = vstv %s845_s8 }
 0x612   :  { %s410_s9 = smul.f32 0.0009765625, %s637_s3  ;;  %v291_v28 = vmul.f32 %v290_v27, %v31_v15 }
 0x614   :  { %v411_v47 = vstv %s410_s9 }
 0x615   :  { %v412_v48 = vsub.f32 %v393_v12, %v411_v47  ;;  %v413_v49 = vsub.f32 %v395_v14, %v411_v47 }
 0x617   :  { %v414_v50 = vmul.f32 %v412_v48, %v412_v48  ;;  %v415_v51 = vmul.f32 %v413_v49, %v413_v49 }
 0x619   :  { %v416_v52 = vsel %vm47_vm0, %v414_v50, 0.0  ;;  %v417_v54 = vsel %vm47_vm0, %v415_v51, 0.0 }
 0x61a   :  { %v418_v55 = vadd.f32 %v417_v54, %v416_v52 }
 0x61c   :  { %419 = vadd.xlane.f32.xlu0 %v418_v55 }
 0x6a9   :  { %v420_v56 = vpop.xlane.xlu0 %419 }
 0x6aa   :  { %v421_v57 = vrot.slane %v420_v56, 4 }
 0x6ac   :  { %v422_v59 = vadd.f32 %v421_v57, %v420_v56 }
 0x6ae   :  { %v423_v60 = vrot.slane %v422_v59, 2 }
 0x6b0   :  { %v424_v61 = vadd.f32 %v423_v60, %v422_v59 }
 0x6b2   :  { %v425_v62 = vrot.slane %v424_v61, 1 }
 0x6b4   :  { %v426_v63 = vadd.f32 %v425_v62, %v424_v61 }
 0x6b6   :  { %638 = vpush %v426_v63 }
 0x6e7   :  { %s639_s4 = spop %638 }
 0x6e8   :  { %s428_s10 = smul.f32 0.0009765625, %s639_s4 }
 0x6ea   :  { %s429_s11 = sadd.f32 1e-05, %s428_s10 }
 0x6ec   :  { %v430_v0 = vstv %s429_s11 }
 0x6ed   :  { %659 = vrsqrt.f32 %v430_v0 }
 0x6f7   :  { %v660_v1 = vpop.eup %659 }
 0x6f8   :  { %640 = vpush %v660_v1 }
 0x729   :  { %s641_s12 = spop %640 }
 0x72a   :  { %v433_v2 = vstv %s641_s12 }
 0x72b   :  { %v434_v3 = vmul.f32 %v433_v2, %v781_v46 }
 0x72d   :  { %437 = vperm.xlu0 %654, %v434_v3  }
 0x7ac   :  { %v438_v4 = vpop.permute.xlu0 %437 }
 0x7ad   :  { %v440_v5 = vmul.f32 %v438_v4, %v412_v48  ;;  %v441_v6 = vmul.f32 %v438_v4, %v413_v49 }
 0x7af   :  { %v442_v7 = vadd.f32 %v440_v5, %v787_v53  ;;  %v443_v8 = vadd.f32 %v441_v6, %v787_v53 }
 0x7b1   :  { %v444_v9 = vmax.f32 %v442_v7, 0.0  ;;  %v445_v10 = vmax.f32 %v443_v8, 0.0 }
 0x7b3   :  { %605 = vmatprep.subr.msk.mxu0 %vm47_vm0, %v445_v10 }
 0x7b4   :  { %606 = vmatpush1.msk.msra.mxu0 %vm47_vm0, %v444_v9 }
 0x7b5   :  { %607 = vmatmul.mubr.msk.f32.vlgmr.msra.gmra.mrb[2].mxu0 %vm178_vm2, %v794_v58 }
 0x888   :  { %v518_v11 = vpop.f32.mrb[2].mxu0 }
 0x889   :  { %v520_v12 = vpop.f32.mrb[3].mxu0 }
 0x88a   :  { %v523_v46 = vadd.f32 %v520_v12, %v518_v11 }
 0x88c   :  { %524 = vadd.xlane.f32.xlu1 %v523_v46 }
 0x919   :  { %v525_v13 = vpop.xlane.xlu1 %524 }
 0x91a   :  { %v526_v14 = vrot.slane %v525_v13, 4 }
 0x91c   :  { %v527_v16 = vadd.f32 %v526_v14, %v525_v13 }
 0x91e   :  { %v528_v17 = vrot.slane %v527_v16, 2 }
 0x920   :  { %v529_v18 = vadd.f32 %v528_v17, %v527_v16 }
 0x922   :  { %v530_v53 = vrot.slane %v529_v18, 1 }
 0x924   :  { %v531_v19 = vadd.f32 %v530_v53, %v529_v18 }
 0x926   :  { %642 = vpush %v531_v19 }
 0x957   :  { %s643_s2 = spop %642 }
 0x958   :  { %s533_s13 = smul.f32 0.00048828125, %s643_s2 }
 0x95a   :  { %v534_v20 = vstv %s533_s13 }
 0x95b   :  { %v535_v21 = vsub.f32 %v518_v11, %v534_v20  ;;  %v536_v22 = vsub.f32 %v520_v12, %v534_v20 }
 0x95d   :  { %v537_v23 = vmul.f32 %v535_v21, %v535_v21  ;;  %v538_v58 = vmul.f32 %v536_v22, %v536_v22 }
 0x95f   :  { %v539_v24 = vadd.f32 %v538_v58, %v537_v23 }
 0x961   :  { %540 = vadd.xlane.f32.xlu1 %v539_v24 }
 0x972   :  { %294 = vperm.xlu1 %653, %v291_v28  }
 0x9ee   :  { %v541_v29 = vpop.xlane.xlu1 %540 }
 0x9ef   :  { %v542_v30 = vrot.slane %v541_v29, 4 }
 0x9f1   :  { %v543_v31 = vadd.f32 %v542_v30, %v541_v29 }
 0x9f2   :  { %v295_v41 = vpop.permute.xlu1 %294 }
 0x9f3   :  { %v544_v32 = vrot.slane %v543_v31, 2  ;;  %v297_v43 = vmul.f32 %v295_v41, %v837_v25  ;;  %v298_v44 = vmul.f32 %v295_v41, %v839_v26 }
 0x9f5   :  { %v545_v33 = vadd.f32 %v544_v32, %v543_v31 }
 0x9f7   :  { %v546_v34 = vrot.slane %v545_v33, 1 }
 0x9f9   :  { %v547_v35 = vadd.f32 %v546_v34, %v545_v33 }
 0x9fb   :  { %644 = vpush %v547_v35 }
 0xa2c   :  { %s645_s16 = spop %644 }
 0xa2d   :  { %s549_s17 = smul.f32 0.00048828125, %s645_s16 }
 0xa2f   :  { %s550_s18 = sadd.f32 1e-05, %s549_s17 }
 0xa31   :  { %v551_v36 = vstv %s550_s18 }
 0xa32   :  { %661 = vrsqrt.f32 %v551_v36 }
 0xa3c   :  { %v662_v37 = vpop.eup %661 }
 0xa3d   :  { %646 = vpush %v662_v37 }
 0xa6e   :  { %s647_s19 = spop %646 }
 0xa6f   :  { %v554_v38 = vstv %s647_s19 }
 0xa70   :  { %v555_v39 = vmul.f32 %v554_v38, %v31_v15 }
 0xa72   :  { %558 = vperm.xlu0 %654, %v555_v39  }
 0xa76   :  { %301 = vperm.xlu0 %654, %v32_v40  }
 0xaf1   :  { %v559_v42 = vpop.permute.xlu0 %558 }
 0xaf2   :  { %v561_v45 = vmul.f32 %v559_v42, %v535_v21  ;;  %v562_v47 = vmul.f32 %v559_v42, %v536_v22 }
 0xaf5   :  { %v302_v48 = vpop.permute.xlu0 %301 }
 0xaf6   :  { %v304_v49 = vadd.f32 %v302_v48, %v297_v43  ;;  %v305_v50 = vadd.f32 %v302_v48, %v298_v44  ;;  %v563_v51 = vadd.f32 %v561_v45, %v302_v48  ;;  %v564_v52 = vadd.f32 %v562_v47, %v302_v48 }
 0xaf8   :  { %v306_v54 = vmax.f32 %v304_v49, 0.0  ;;  %v307_v55 = vmax.f32 %v305_v50, 0.0  ;;  %v565_v56 = vmax.f32 %v563_v51, 0.0  ;;  %v566_v57 = vmax.f32 %v564_v52, 0.0 }
 0xafa   :  { %308 = vst [vmem:[#allocation2] sm:$0xff] %v306_v54  ;;  %309 = vst [vmem:[#allocation2 + $0x8] sm:$0xff] %v307_v55 }
 0xafb   :  { %568 = vst [vmem:[#allocation2 + $0x10] sm:$0xff] %v565_v56  ;;  %569 = vst [vmem:[#allocation2 + $0x18] sm:$0xff] %v566_v57 }
 0xafc   :  { %674 = shalt.err (!%p671_p4)
}
 0xafd   :  { %s675_s24 = scalar_lea.hbm %s884_s7, 512 }
 0xafe   :  { %p676_p5 = scmp.ne.s32.totalorder %s884_s7, %s675_s24  ;;  %p679_p6 = scmp.lt.u32.totalorder %s675_s24, %s884_s7 }
 0xb00   :  { %p681_p7 = pnand %p679_p6, %p676_p5 }
 0xb02   :  { %684 = shalt.err (!%p681_p7)
}
 0xb03   :  { %s690_s28 = smov 256   ;;  %s691_s29 = smov 16  }
 0xb04   :  { %581 = dma.vmem_to_hbm [thread:$0]  %s576_s22, 512, %s884_s7, [#allocation3], %s690_s28, %s690_s28, %s691_s29  }
 0xb05   :  { %685 = dma.done.wait [#allocation3], 512  }
 0xb06   :  { %686 = vsyncadd [#allocation3], 4294966784 }
 0xb07   :  { %585 = vsyncpa [#allocation3], 1 }

</bundles_post_ra>
